<compile_context>
chip_gen: v5e
topology: v5e:2x2
jax: 0.10.0
libtpu: 0.0.40
codegen_flags: <defaults>
</compile_context>

<pallas_src>
import functools

import jax
import jax.numpy as jnp
from jax import lax
from jax.experimental import pallas as pl
from jax.experimental.pallas import tpu as pltpu


def _round_up(x, m):
    return (x + m - 1) // m * m


def _sigmoid(x):
    # One EUP op (tanh) instead of exp + reciprocal.
    return 0.5 * jnp.tanh(0.5 * x) + 0.5


# ---------------------------------------------------------------------------
# Kernel 1: hoisted input projection  gx[t, b, :] = x[t, b, :] @ W_ih_packed
# for ALL timesteps; one big row-tiled matmul on a parallel grid. Output is
# bf16; the bias is added (in f32) inside the recurrence kernel.
# ---------------------------------------------------------------------------
def input_proj_kernel(x_ref, w_ih_ref, gx_ref):
    tproj, bp, ep = x_ref.shape
    # Merge (time, batch) into one big MXU M dimension (layout-preserving:
    # bp is a multiple of 8, last dim stays lane-dense).
    x2 = x_ref[...].reshape(tproj * bp, ep)
    g = jnp.dot(x2, w_ih_ref[...], preferred_element_type=jnp.float32)
    gx_ref[...] = g.astype(gx_ref.dtype).reshape(gx_ref.shape)


# ---------------------------------------------------------------------------
# Kernel 2: LSTM recurrence; grid = (batch blocks [parallel], time blocks
# [arbitrary]). The h_n / c_n output blocks (constant index over time) double
# as the recurrent carries. Output is written batch-first directly.
# ---------------------------------------------------------------------------
def lstm_recurrent_kernel(gx_ref, lens_ref, w_hh_ref, bias_ref,
                          out_ref, hn_ref, cn_ref, *, time_block, hidden,
                          unroll):
    ti = pl.program_id(1)

    @pl.when(ti == 0)
    def _init():
        hn_ref[...] = jnp.zeros_like(hn_ref)
        cn_ref[...] = jnp.zeros_like(cn_ref)

    Hp = hidden
    lens = lens_ref[...]            # (Bb, 1) int32
    bias = bias_ref[...]            # (1, 4Hp) f32
    t0 = ti * time_block

    def step(s, carry):
        h, c = carry                # (Bb, Hp) f32 carries
        gates = (jnp.dot(h.astype(jnp.bfloat16), w_hh_ref[...],
                         preferred_element_type=jnp.float32)
                 + gx_ref[s].astype(jnp.float32) + bias)
        # TODO(synk): on v6e/v7x the gate elementwise math below could run in
        # bf16 (bf16 VPU/EUP); kept f32 so the same kernel is optimal-ish and
        # accurate on v5e too.
        i_g = _sigmoid(gates[:, 0 * Hp:1 * Hp])
        f_g = _sigmoid(gates[:, 1 * Hp:2 * Hp])
        g_g = jnp.tanh(gates[:, 2 * Hp:3 * Hp])
        o_g = _sigmoid(gates[:, 3 * Hp:4 * Hp])
        c_new = f_g * c + i_g * g_g
        h_new = o_g * jnp.tanh(c_new)

        # PackedSequence semantics: freeze state and zero output past length.
        valid = jnp.broadcast_to(t0 + s < lens, h.shape)   # hoisted broadcast
        h = jnp.where(valid, h_new, h)
        c = jnp.where(valid, c_new, c)
        # Batch-first store (dynamic sublane offset) -> no wrapper transpose.
        out_ref[:, s, :] = jnp.where(valid, h_new, 0.0).astype(out_ref.dtype)
        return (h, c)

    h, c = lax.fori_loop(0, time_block, step,
                         (hn_ref[...], cn_ref[...]), unroll=unroll)
    hn_ref[...] = h
    cn_ref[...] = c


def torch_rnn_model_forward(params, X_tokens, seq_lengths, *,
                            time_block=8, batch_block=None, unroll=2):
    """Equivalent of TorchRNNModel.forward (use_embedding=True, single-layer
    unidirectional LSTM, batch_first=True). Returns the padded outputs
    (zeros past each length, i.e. the data pad_packed_sequence would yield)
    and the state tuple (h_n, c_n), each (1, B, H)."""
    emb = params["embedding"]                    # (V, E) f32
    w_ih, w_hh, bias = params["w_ih"], params["w_hh"], params["bias"]
    B, T = X_tokens.shape
    V, E = emb.shape
    H = w_hh.shape[1]
    assert w_ih.shape == (4 * H, E) and w_hh.shape == (4 * H, H)
    assert bias.shape == (4 * H,)

    # Lane/sublane aligned internal sizes.
    Bp = _round_up(B, 8)
    Ep = _round_up(E, 128)
    Hp = _round_up(H, 128)
    Tb = time_block
    # Projection time tile decoupled from Tb: target >= 512 rows for the MXU
    # without over-padding short sequences. Tp divides by both Tproj and Tb.
    kproj = max(1, min(-(-512 // (Bp * Tb)), -(-T // Tb)))
    Tproj = Tb * kproj
    Tp = _round_up(T, Tproj)

    if batch_block is None:
        # >= 2 batch blocks lets v7x's two TensorCores split the recurrence.
        batch_block = Bp // 2 if Bp % 16 == 0 else Bp
    Bb = batch_block
    assert Bp % Bb == 0 and Bb % 8 == 0

    # Pack weights (4H, D) -> (Dp, 4*Hp) so each gate block is lane-aligned at
    # k*Hp in the padded gate dimension (PyTorch gate order i, f, g, o).
    def pack(w, d, dp):
        w4 = w.reshape(4, H, d)
        w4 = jnp.pad(w4, ((0, 0), (0, Hp - H), (0, dp - d)))
        return jnp.transpose(w4, (2, 0, 1)).reshape(dp, 4 * Hp)

    w_ih_p = pack(w_ih, E, Ep).astype(jnp.bfloat16)            # (Ep, 4Hp)
    w_hh_p = pack(w_hh, H, Hp).astype(jnp.bfloat16)            # (Hp, 4Hp)
    bias_p = jnp.pad(bias.reshape(4, H), ((0, 0), (0, Hp - H)))
    bias_p = bias_p.reshape(1, 4 * Hp).astype(jnp.float32)

    # Embedding gather writes the activations directly in padded, time-major,
    # bf16 form: only the tiny token matrix / table are padded & transposed,
    # so there is no extra HBM pass over the (Tp, Bp, Ep) activations.
    # TODO(synk): the gather itself (nn.Embedding lookup) stays in plain XLA.
    emb_p = jnp.pad(emb, ((0, 0), (0, Ep - E))).astype(jnp.bfloat16)
    tok_p = jnp.pad(X_tokens.astype(jnp.int32), ((0, Bp - B), (0, Tp - T)))
    x_tm = emb_p[tok_p.T]                                      # (Tp, Bp, Ep)

    lens = jnp.pad(seq_lengths.astype(jnp.int32), (0, Bp - B)).reshape(Bp, 1)

    # Explicit VMEM budget (review item); re-tune downward for production
    # shapes on v7x (64 MiB physical VMEM).
    vmem_limit = 64 * 1024 * 1024

    # --- Kernel 1: batched input projection on a parallel grid -------------
    gx = pl.pallas_call(
        input_proj_kernel,
        grid_spec=pltpu.PrefetchScalarGridSpec(
            num_scalar_prefetch=0,
            grid=(Tp // Tproj,),
            in_specs=[
                pl.BlockSpec((Tproj, Bp, Ep), lambda i: (i, 0, 0)),
                # Constant operand: single-buffer (no re-DMA ever).
                pl.BlockSpec((Ep, 4 * Hp), lambda i: (0, 0),
                             pipeline_mode=pl.Buffered(1)),
            ],
            out_specs=pl.BlockSpec((Tproj, Bp, 4 * Hp), lambda i: (i, 0, 0)),
        ),
        out_shape=jax.ShapeDtypeStruct((Tp, Bp, 4 * Hp), jnp.bfloat16),
        compiler_params=pltpu.CompilerParams(
            dimension_semantics=("parallel",),
            vmem_limit_bytes=vmem_limit),
    )(x_tm, w_ih_p)

    # --- Kernel 2: serial recurrence, Tb timesteps per grid step,
    #     batch-parallel outer axis ----------------------------------------
    kernel = functools.partial(lstm_recurrent_kernel,
                               time_block=Tb, hidden=Hp, unroll=unroll)
    outs_p, hn_p, cn_p = pl.pallas_call(
        kernel,
        grid_spec=pltpu.PrefetchScalarGridSpec(
            num_scalar_prefetch=0,
            grid=(Bp // Bb, Tp // Tb),
            in_specs=[
                pl.BlockSpec((Tb, Bb, 4 * Hp), lambda b, i: (i, b, 0)),   # gx
                pl.BlockSpec((Bb, 1), lambda b, i: (b, 0),
                             pipeline_mode=pl.Buffered(1)),               # lens
                pl.BlockSpec((Hp, 4 * Hp), lambda b, i: (0, 0),
                             pipeline_mode=pl.Buffered(1)),               # W_hh
                pl.BlockSpec((1, 4 * Hp), lambda b, i: (0, 0),
                             pipeline_mode=pl.Buffered(1)),               # bias
            ],
            out_specs=(
                # Output written batch-first directly (no wrapper transpose).
                pl.BlockSpec((Bb, Tb, Hp), lambda b, i: (b, i, 0)),
                pl.BlockSpec((Bb, Hp), lambda b, i: (b, 0)),              # h_n
                pl.BlockSpec((Bb, Hp), lambda b, i: (b, 0)),              # c_n
            ),
        ),
        out_shape=(
            jax.ShapeDtypeStruct((Bp, Tp, Hp), jnp.float32),
            jax.ShapeDtypeStruct((Bp, Hp), jnp.float32),
            jax.ShapeDtypeStruct((Bp, Hp), jnp.float32),
        ),
        compiler_params=pltpu.CompilerParams(
            dimension_semantics=("parallel", "arbitrary"),
            vmem_limit_bytes=vmem_limit),
    )(gx, lens, w_hh_p, bias_p)

    outputs = outs_p[:B, :T, :H]                               # (B, T, H)
    h_n = hn_p[:B, :H][None]                                   # (1, B, H)
    c_n = cn_p[:B, :H][None]
    return outputs, (h_n, c_n)


def lstm_reference(emb, X_tokens, seq_lengths, w_ih, w_hh, bias):
    """Pure-JAX reference mirroring the kernel's precision policy
    (bf16 inputs/weights, f32 accumulation, bf16-stored input projection)."""
    x = emb.astype(jnp.bfloat16)[X_tokens]                     # (B, T, E)
    B, T, _ = x.shape
    H = w_hh.shape[1]
    w_ih_t = w_ih.T.astype(jnp.bfloat16)
    w_hh_t = w_hh.T.astype(jnp.bfloat16)
    gx = jnp.dot(x, w_ih_t, preferred_element_type=jnp.float32)
    gx = gx.astype(jnp.bfloat16).astype(jnp.float32)           # bf16-stored gx
    h = jnp.zeros((B, H), jnp.float32)
    c = jnp.zeros((B, H), jnp.float32)
    outs = []
    for t in range(T):
        gates = (gx[:, t]
                 + jnp.dot(h.astype(jnp.bfloat16), w_hh_t,
                           preferred_element_type=jnp.float32)
                 + bias)
        i_g = jax.nn.sigmoid(gates[:, 0 * H:1 * H])
        f_g = jax.nn.sigmoid(gates[:, 1 * H:2 * H])
        g_g = jnp.tanh(gates[:, 2 * H:3 * H])
        o_g = jax.nn.sigmoid(gates[:, 3 * H:4 * H])
        c_new = f_g * c + i_g * g_g
        h_new = o_g * jnp.tanh(c_new)
        valid = (t < seq_lengths)[:, None]
        h = jnp.where(valid, h_new, h)
        c = jnp.where(valid, c_new, c)
        outs.append(jnp.where(valid, h_new, 0.0))
    return jnp.stack(outs, axis=1), (h[None], c[None])


if __name__ == "__main__":
    # Small config consistent with TorchRNNModel (single-layer unidirectional
    # LSTM, use_embedding=True); the wrapper pads internally to aligned shapes.
    vocab_size, embed_dim, hidden_dim = 20, 32, 32
    B, T = 2, 12

    key = jax.random.PRNGKey(0)
    k_emb, k_wih, k_whh, k_bih, k_bhh, k_x = jax.random.split(key, 6)
    bound = 1.0 / jnp.sqrt(hidden_dim)
    params = {
        "embedding": jax.random.normal(k_emb, (vocab_size, embed_dim), jnp.float32),
        "w_ih": jax.random.uniform(k_wih, (4 * hidden_dim, embed_dim),
                                   jnp.float32, -bound, bound),
        "w_hh": jax.random.uniform(k_whh, (4 * hidden_dim, hidden_dim),
                                   jnp.float32, -bound, bound),
        # PyTorch LSTM has separate b_ih / b_hh; they always appear summed.
        "bias": (jax.random.uniform(k_bih, (4 * hidden_dim,), jnp.float32, -bound, bound)
                 + jax.random.uniform(k_bhh, (4 * hidden_dim,), jnp.float32, -bound, bound)),
    }

    X_tokens = jax.random.randint(k_x, (B, T), 0, vocab_size, jnp.int32)
    seq_lengths = jnp.array([T, 5], jnp.int32)

    outputs, (h_n, c_n) = jax.block_until_ready(
        torch_rnn_model_forward(params, X_tokens, seq_lengths))

    # Sanity check against the pure-JAX reference.
    ref_out, (ref_h, ref_c) = lstm_reference(
        params["embedding"], X_tokens, seq_lengths,
        params["w_ih"], params["w_hh"], params["bias"])
    assert outputs.shape == (B, T, hidden_dim)
    assert h_n.shape == (1, B, hidden_dim) and c_n.shape == (1, B, hidden_dim)
    assert jnp.allclose(outputs, ref_out, atol=2e-3), \
        float(jnp.max(jnp.abs(outputs - ref_out)))
    assert jnp.allclose(h_n, ref_h, atol=2e-3)
    assert jnp.allclose(c_n, ref_c, atol=2e-3)

    # TODO(synk): PyTorch returns a PackedSequence object for `outputs`; here we
    # return the padded equivalent (zeros past each length), which carries the
    # same data pad_packed_sequence would yield.
    print("KERNEL_OK")
</pallas_src>

<mosaic_0001>
module attributes {stable_mosaic.version = 11 : i64} {
  func.func @input_proj_kernel(%arg0: i32, %arg1: memref<16x8x128xbf16, #tpu.memory_space<vmem>>, %arg2: memref<128x512xbf16, #tpu.memory_space<vmem>>, %arg3: memref<16x8x512xbf16, #tpu.memory_space<vmem>>) attributes {dimension_semantics = [#tpu.dimension_semantics<parallel>], iteration_bounds = array<i64: 1>, scalar_prefetch = 0 : i64, scratch_operands = 0 : i64, tpu.core_type = #tpu.core_type<tc>, window_params = [{transform_indices = @transform_0, window_bounds = array<i64: 16, 8, 128>}, {pipeline_mode = #tpu.pipeline_mode<synchronous>, transform_indices = @transform_1, window_bounds = array<i64: 128, 512>}, {transform_indices = @transform_2, window_bounds = array<i64: 16, 8, 512>}]} {
    %c0 = arith.constant 0 : index
    %c0_0 = arith.constant 0 : index
    %c0_1 = arith.constant 0 : index
    %0 = vector.load %arg1[%c0, %c0_0, %c0_1] : memref<16x8x128xbf16, #tpu.memory_space<vmem>>, vector<16x8x128xbf16>
    %1 = vector.shape_cast %0 : vector<16x8x128xbf16> to vector<128x128xbf16>
    %c0_2 = arith.constant 0 : index
    %c0_3 = arith.constant 0 : index
    %2 = vector.load %arg2[%c0_2, %c0_3] : memref<128x512xbf16, #tpu.memory_space<vmem>>, vector<128x512xbf16>
    %cst = arith.constant dense<0.000000e+00> : vector<128x512xf32>
    %3 = tpu.matmul %1, %2, %cst {dimension_numbers = #tpu.dot_dimension_numbers<[1], [0], [0], [1], [0, 0, 1, 1], [], []>} : vector<128x128xbf16>, vector<128x512xbf16>, vector<128x512xf32> -> vector<128x512xf32>
    %4 = arith.truncf %3 : vector<128x512xf32> to vector<128x512xbf16>
    %5 = vector.shape_cast %4 : vector<128x512xbf16> to vector<16x8x512xbf16>
    %c0_4 = arith.constant 0 : index
    %c0_5 = arith.constant 0 : index
    %c0_6 = arith.constant 0 : index
    %6 = vector.load %arg3[%c0_4, %c0_5, %c0_6] : memref<16x8x512xbf16, #tpu.memory_space<vmem>>, vector<16x8x512xbf16>
    tpu.vector_store %arg3[%c0_4, %c0_5, %c0_6], %5 {strides = array<i32>} : memref<16x8x512xbf16, #tpu.memory_space<vmem>>, vector<16x8x512xbf16>,
    return
  }
  func.func @transform_0(%arg0: i32) -> (i32, i32, i32) {
    %c0_i32 = arith.constant 0 : i32
    %c0_i32_0 = arith.constant 0 : i32
    %c0_i32_1 = arith.constant 0 : i32
    return %arg0, %c0_i32, %c0_i32_0 : i32, i32, i32
  }
  func.func @transform_1(%arg0: i32) -> (i32, i32) {
    %c0_i32 = arith.constant 0 : i32
    %c0_i32_0 = arith.constant 0 : i32
    %c0_i32_1 = arith.constant 0 : i32
    return %c0_i32, %c0_i32_0 : i32, i32
  }
  func.func @transform_2(%arg0: i32) -> (i32, i32, i32) {
    %c0_i32 = arith.constant 0 : i32
    %c0_i32_0 = arith.constant 0 : i32
    %c0_i32_1 = arith.constant 0 : i32
    return %arg0, %c0_i32, %c0_i32_0 : i32, i32, i32
  }
}

</mosaic_0001>

<bundles_post_ra>
// kernel: tpu_custom_call.1
= control target key start
LH: loop header
LB: loop body
LE: loop exit
PB: predicated region body
PF: predicated region fallthrough
CT: control target
= control target key end

     0   :  { %7 = vsyncpa [#allocation3], 0  ;;  %s902_s0 = inlined_call_operand.hbm [shape: bf16[16,8,128], index: 0, kind: input, shape index: {}]   ;;  %s903_s1 = inlined_call_operand.hbm [shape: bf16[128,512], index: 1, kind: input, shape index: {}]   ;;  %s904_s2 = inlined_call_operand.hbm [shape: bf16[16,8,512], index: 2, kind: output, shape index: {}]  }
   0x1   :  { %8 = vsyncpa [#allocation6], 0 }
   0x2   :  { %9 = vsyncpa [#allocation4], 0  ;;  %s14_s11 = sshll.u32 %s902_s0, 4  ;;  %s865_s12 = smov [#allocation2]   ;;  %s15_s11 = int_to_ptr.hbm [resolvable:$true] %s14_s11 }
   0x3   :  { %s16_s13 = sshll.u32 %s865_s12, 4  ;;  %s27_s16 = sshll.u32 %s903_s1, 4  ;;  %s17_s13 = int_to_ptr.vmem [resolvable:$true] %s16_s13  ;;  %s28_s16 = int_to_ptr.hbm [resolvable:$true] %s27_s16 }
   0x4   :  { %s866_s17 = smov 64   ;;  %s867_s18 = smov 4  }
   0x5   :  { %22 = dma.hbm_to_vmem [thread:$0]  %s15_s11, 1024, %s17_s13, [#allocation3], %s866_s17, %s866_s17, %s867_s18  }
   0x6   :  { %s868_s19 = smov [#allocation5]   ;;  %s869_s21 = smov 256  }
   0x7   :  { %s29_s20 = sshll.u32 %s868_s19, 4  ;;  %s870_s22 = smov 16   ;;  %s30_s20 = int_to_ptr.vmem [resolvable:$true] %s29_s20 }
   0x8   :  { %35 = dma.hbm_to_vmem [thread:$0]  %s28_s16, 4096, %s30_s20, [#allocation6], %s869_s21, %s869_s21, %s870_s22  }
   0x9   :  { %859 = dma.done.wait [#allocation3], 1024  }
   0xa   :  { %860 = vsyncadd [#allocation3], 4294966272 }
   0xb   :  { %861 = dma.done.wait [#allocation6], 4096  }
   0xc   :  { %862 = vsyncadd [#allocation6], 4294963200  ;;  %v726_v0 = vld [vmem:[#allocation5 + $0xe0] sm:$0xf]  ;;  %v778_v1 = vld [vmem:[#allocation5 + $0xec] sm:$0xf0] }
   0xd   :  { %v776_v2 = vld [vmem:[#allocation5 + $0xe4] sm:$0xf]  ;;  %v727_v3 = vor.u32 %v778_v1, %v726_v0  ;;  %v728_v4 = vld [vmem:[#allocation5 + $0xf0] sm:$0xf0]  ;;  %v734_v5 = vld [vmem:[#allocation5 + $0xe8] sm:$0xf] }
   0xe   :  { %v779_v6 = vld [vmem:[#allocation5 + $0xf4] sm:$0xf0]  ;;  %v731_v7 = vor.u32 %v776_v2, %v728_v4  ;;  %v777_v9 = vld [vmem:[#allocation5 + $0xec] sm:$0xf]  ;;  %v736_v10 = vld [vmem:[#allocation5 + $0xf8] sm:$0xf0] }
   0xf   :  { %v735_v8 = vor.u32 %v779_v6, %v734_v5  ;;  %v710_v11 = vld [vmem:[#allocation5 + $0xc0] sm:$0xf]  ;;  %300 = vmatpush.bf16.msra.mxu0 %v727_v3  ;;  %v739_v12 = vor.u32 %v777_v9, %v736_v10  ;;  %v774_v13 = vld [vmem:[#allocation5 + $0xcc] sm:$0xf0]  ;;  %v772_v14 = vld [vmem:[#allocation5 + $0xc4] sm:$0xf] }
  0x10   :  { %v712_v15 = vld [vmem:[#allocation5 + $0xd0] sm:$0xf0]  ;;  %349 = vmatpush.bf16.msra.mxu1 %v731_v7  ;;  %v711_v16 = vor.u32 %v774_v13, %v710_v11  ;;  %v718_v18 = vld [vmem:[#allocation5 + $0xc8] sm:$0xf]  ;;  %v775_v19 = vld [vmem:[#allocation5 + $0xd4] sm:$0xf0] }
  0x11   :  { %398 = vmatpush.bf16.msra.mxu2 %v735_v8  ;;  %v715_v17 = vor.u32 %v772_v14, %v712_v15  ;;  %v773_v20 = vld [vmem:[#allocation5 + $0xcc] sm:$0xf]  ;;  %447 = vmatpush.bf16.msra.mxu3 %v739_v12  ;;  %v719_v21 = vor.u32 %v775_v19, %v718_v18  ;;  %v720_v22 = vld [vmem:[#allocation5 + $0xd8] sm:$0xf0]  ;;  %v694_v23 = vld [vmem:[#allocation5 + $0xa0] sm:$0xf] }
  0x12   :  { %v770_v24 = vld [vmem:[#allocation5 + $0xac] sm:$0xf0]  ;;  %v723_v25 = vor.u32 %v773_v20, %v720_v22  ;;  %v768_v26 = vld [vmem:[#allocation5 + $0xa4] sm:$0xf]  ;;  %v696_v27 = vld [vmem:[#allocation5 + $0xb0] sm:$0xf0] }
  0x13   :  { %v702_v28 = vld [vmem:[#allocation5 + $0xa8] sm:$0xf]  ;;  %301 = vmatpush.bf16.msra.mxu0 %v711_v16  ;;  %v695_v29 = vor.u32 %v770_v24, %v694_v23  ;;  %v771_v30 = vld [vmem:[#allocation5 + $0xb4] sm:$0xf0]  ;;  %v769_v31 = vld [vmem:[#allocation5 + $0xac] sm:$0xf]  ;;  %v699_v33 = vor.u32 %v768_v26, %v696_v27 }
  0x14   :  { %v704_v32 = vld [vmem:[#allocation5 + $0xb8] sm:$0xf0]  ;;  %350 = vmatpush.bf16.msra.mxu1 %v715_v17  ;;  %v703_v34 = vor.u32 %v771_v30, %v702_v28  ;;  %v678_v35 = vld [vmem:[#allocation5 + $0x80] sm:$0xf]  ;;  %v766_v36 = vld [vmem:[#allocation5 + $0x8c] sm:$0xf0] }
  0x15   :  { %399 = vmatpush.bf16.msra.mxu2 %v719_v21  ;;  %v764_v37 = vld [vmem:[#allocation5 + $0x84] sm:$0xf]  ;;  %448 = vmatpush.bf16.msra.mxu3 %v723_v25  ;;  %v707_v38 = vor.u32 %v769_v31, %v704_v32  ;;  %v680_v39 = vld [vmem:[#allocation5 + $0x90] sm:$0xf0]  ;;  %v686_v40 = vld [vmem:[#allocation5 + $0x88] sm:$0xf]  ;;  %v679_v44 = vor.u32 %v766_v36, %v678_v35 }
  0x16   :  { %v767_v41 = vld [vmem:[#allocation5 + $0x94] sm:$0xf0]  ;;  %v765_v42 = vld [vmem:[#allocation5 + $0x8c] sm:$0xf]  ;;  %v688_v43 = vld [vmem:[#allocation5 + $0x98] sm:$0xf0]  ;;  %v683_v45 = vor.u32 %v764_v37, %v680_v39 }
  0x17   :  { %302 = vmatpush.bf16.msra.mxu0 %v695_v29  ;;  %v687_v46 = vor.u32 %v767_v41, %v686_v40  ;;  %v662_v47 = vld [vmem:[#allocation5 + $0x60] sm:$0xf]  ;;  %v762_v48 = vld [vmem:[#allocation5 + $0x6c] sm:$0xf0]  ;;  %v760_v49 = vld [vmem:[#allocation5 + $0x64] sm:$0xf]  ;;  %v691_v50 = vor.u32 %v765_v42, %v688_v43 }
  0x18   :  { %351 = vmatpush.bf16.msra.mxu1 %v699_v33  ;;  %v664_v51 = vld [vmem:[#allocation5 + $0x70] sm:$0xf0]  ;;  %v670_v52 = vld [vmem:[#allocation5 + $0x68] sm:$0xf]  ;;  %v763_v53 = vld [vmem:[#allocation5 + $0x74] sm:$0xf0]  ;;  %v663_v56 = vor.u32 %v762_v48, %v662_v47 }
  0x19   :  { %400 = vmatpush.bf16.msra.mxu2 %v703_v34  ;;  %449 = vmatpush.bf16.msra.mxu3 %v707_v38  ;;  %v761_v54 = vld [vmem:[#allocation5 + $0x6c] sm:$0xf]  ;;  %v672_v55 = vld [vmem:[#allocation5 + $0x78] sm:$0xf0]  ;;  %v667_v57 = vor.u32 %v760_v49, %v664_v51  ;;  %v671_v58 = vor.u32 %v763_v53, %v670_v52  ;;  %v646_v59 = vld [vmem:[#allocation5 + $0x40] sm:$0xf] }
  0x1a   :  { %v758_v60 = vld [vmem:[#allocation5 + $0x4c] sm:$0xf0]  ;;  %v756_v61 = vld [vmem:[#allocation5 + $0x44] sm:$0xf]  ;;  %v675_v62 = vor.u32 %v761_v54, %v672_v55  ;;  %v648_v63 = vld [vmem:[#allocation5 + $0x50] sm:$0xf0] }
  0x1b   :  { %303 = vmatpush.bf16.msra.mxu0 %v679_v44  ;;  %v654_v0 = vld [vmem:[#allocation5 + $0x48] sm:$0xf]  ;;  %v759_v1 = vld [vmem:[#allocation5 + $0x54] sm:$0xf0]  ;;  %v757_v2 = vld [vmem:[#allocation5 + $0x4c] sm:$0xf]  ;;  %v647_v4 = vor.u32 %v758_v60, %v646_v59  ;;  %v651_v5 = vor.u32 %v756_v61, %v648_v63 }
  0x1c   :  { %352 = vmatpush.bf16.msra.mxu1 %v683_v45  ;;  %v656_v3 = vld [vmem:[#allocation5 + $0x58] sm:$0xf0]  ;;  %v655_v6 = vor.u32 %v759_v1, %v654_v0  ;;  %v630_v7 = vld [vmem:[#allocation5 + $0x20] sm:$0xf]  ;;  %v754_v8 = vld [vmem:[#allocation5 + $0x2c] sm:$0xf0] }
  0x1d   :  { %401 = vmatpush.bf16.msra.mxu2 %v687_v46  ;;  %450 = vmatpush.bf16.msra.mxu3 %v691_v50  ;;  %v752_v9 = vld [vmem:[#allocation5 + $0x24] sm:$0xf]  ;;  %v659_v10 = vor.u32 %v757_v2, %v656_v3  ;;  %v632_v11 = vld [vmem:[#allocation5 + $0x30] sm:$0xf0]  ;;  %v638_v12 = vld [vmem:[#allocation5 + $0x28] sm:$0xf]  ;;  %v631_v16 = vor.u32 %v754_v8, %v630_v7 }
  0x1e   :  { %v755_v13 = vld [vmem:[#allocation5 + $0x34] sm:$0xf0]  ;;  %v753_v14 = vld [vmem:[#allocation5 + $0x2c] sm:$0xf]  ;;  %v640_v15 = vld [vmem:[#allocation5 + $0x38] sm:$0xf0]  ;;  %v635_v17 = vor.u32 %v752_v9, %v632_v11 }
  0x1f   :  { %304 = vmatpush.bf16.msra.mxu0 %v663_v56  ;;  %v639_v18 = vor.u32 %v755_v13, %v638_v12  ;;  %v614_v19 = vld [vmem:[#allocation5] sm:$0xf]  ;;  %v750_v20 = vld [vmem:[#allocation5 + $0xc] sm:$0xf0]  ;;  %v748_v21 = vld [vmem:[#allocation5 + $0x4] sm:$0xf]  ;;  %v643_v22 = vor.u32 %v753_v14, %v640_v15 }
  0x20   :  { %353 = vmatpush.bf16.msra.mxu1 %v667_v57  ;;  %v616_v23 = vld [vmem:[#allocation5 + $0x10] sm:$0xf0]  ;;  %v622_v24 = vld [vmem:[#allocation5 + $0x8] sm:$0xf]  ;;  %v751_v25 = vld [vmem:[#allocation5 + $0x14] sm:$0xf0]  ;;  %v615_v28 = vor.u32 %v750_v20, %v614_v19 }
  0x21   :  { %402 = vmatpush.bf16.msra.mxu2 %v671_v58  ;;  %451 = vmatpush.bf16.msra.mxu3 %v675_v62  ;;  %v749_v26 = vld [vmem:[#allocation5 + $0xc] sm:$0xf]  ;;  %v624_v27 = vld [vmem:[#allocation5 + $0x18] sm:$0xf0]  ;;  %v619_v29 = vor.u32 %v748_v21, %v616_v23  ;;  %v623_v30 = vor.u32 %v751_v25, %v622_v24  ;;  %v740_v32 = vld [vmem:[#allocation2] sm:$0xff]  ;;  %s871_s0 = smov [#allocation7]  }
  0x22   :  { %v627_v31 = vor.u32 %v749_v26, %v624_v27  ;;  %v741_v33 = vld [vmem:[#allocation2 + $0x8] sm:$0xff]  ;;  %v742_v34 = vld [vmem:[#allocation2 + $0x10] sm:$0xff]  ;;  %v743_v35 = vld [vmem:[#allocation2 + $0x18] sm:$0xff]  ;;  %s564_s1 = sshll.u32 %s871_s0, 4  ;;  %s566_s25 = sshll.u32 %s904_s2, 4  ;;  %s565_s1 = int_to_ptr.vmem [resolvable:$true] %s564_s1  ;;  %s567_s25 = int_to_ptr.hbm [resolvable:$true] %s566_s25 }
  0x23   :  { %305 = vmatpush.bf16.msra.mxu0 %v647_v4  ;;  %v744_v36 = vld [vmem:[#allocation2 + $0x20] sm:$0xff]  ;;  %v745_v37 = vld [vmem:[#allocation2 + $0x28] sm:$0xff]  ;;  %v746_v38 = vld [vmem:[#allocation2 + $0x30] sm:$0xff] }
  0x24   :  { %354 = vmatpush.bf16.msra.mxu1 %v651_v5  ;;  %v747_v39 = vld [vmem:[#allocation2 + $0x38] sm:$0xff] }
  0x25   :  { %403 = vmatpush.bf16.msra.mxu2 %v655_v6  ;;  %452 = vmatpush.bf16.msra.mxu3 %v659_v10 }
  0x27   :  { %306 = vmatpush.bf16.msra.mxu0 %v631_v16 }
  0x28   :  { %355 = vmatpush.bf16.msra.mxu1 %v635_v17 }
  0x29   :  { %404 = vmatpush.bf16.msra.mxu2 %v639_v18  ;;  %453 = vmatpush.bf16.msra.mxu3 %v643_v22 }
  0x2b   :  { %307 = vmatpush.bf16.msra.mxu0 %v615_v28 }
  0x2c   :  { %356 = vmatpush.bf16.msra.mxu1 %v619_v29 }
  0x2d   :  { %405 = vmatpush.bf16.msra.mxu2 %v623_v30  ;;  %454 = vmatpush.bf16.msra.mxu3 %v627_v31 }
  0x2e   :  { %308 = vmatmul.bf16.vlgmr.msra.gmra.mxu0 %v740_v32 }
  0x2f   :  { %357 = vmatmul.bf16.vlgmr.msra.gmra.mxu1 %v740_v32 }
  0x30   :  { %406 = vmatmul.bf16.vlgmr.msra.gmra.mxu2 %v740_v32  ;;  %455 = vmatmul.bf16.vlgmr.msra.gmra.mxu3 %v740_v32 }
  0x3e   :  { %313 = vmatmul.bf16.gmra.mxu0 %v741_v33 }
  0x3f   :  { %362 = vmatmul.bf16.gmra.mxu1 %v741_v33 }
  0x40   :  { %411 = vmatmul.bf16.gmra.mxu2 %v741_v33  ;;  %460 = vmatmul.bf16.gmra.mxu3 %v741_v33 }
  0x4e   :  { %318 = vmatmul.bf16.gmra.mxu0 %v742_v34 }
  0x4f   :  { %367 = vmatmul.bf16.gmra.mxu1 %v742_v34 }
  0x50   :  { %416 = vmatmul.bf16.gmra.mxu2 %v742_v34  ;;  %465 = vmatmul.bf16.gmra.mxu3 %v742_v34 }
  0x5e   :  { %323 = vmatmul.bf16.gmra.mxu0 %v743_v35 }
  0x5f   :  { %372 = vmatmul.bf16.gmra.mxu1 %v743_v35 }
  0x60   :  { %421 = vmatmul.bf16.gmra.mxu2 %v743_v35  ;;  %470 = vmatmul.bf16.gmra.mxu3 %v743_v35 }
  0x6e   :  { %328 = vmatmul.bf16.gmra.mxu0 %v744_v36 }
  0x6f   :  { %377 = vmatmul.bf16.gmra.mxu1 %v744_v36 }
  0x70   :  { %426 = vmatmul.bf16.gmra.mxu2 %v744_v36  ;;  %475 = vmatmul.bf16.gmra.mxu3 %v744_v36 }
  0x7e   :  { %333 = vmatmul.bf16.gmra.mxu0 %v745_v37 }
  0x7f   :  { %382 = vmatmul.bf16.gmra.mxu1 %v745_v37 }
  0x80   :  { %431 = vmatmul.bf16.gmra.mxu2 %v745_v37  ;;  %480 = vmatmul.bf16.gmra.mxu3 %v745_v37 }
  0x8e   :  { %338 = vmatmul.bf16.gmra.mxu0 %v746_v38 }
  0x8f   :  { %387 = vmatmul.bf16.gmra.mxu1 %v746_v38 }
  0x90   :  { %436 = vmatmul.bf16.gmra.mxu2 %v746_v38  ;;  %485 = vmatmul.bf16.gmra.mxu3 %v746_v38 }
  0x9e   :  { %343 = vmatmul.bf16.gmra.mxu0 %v747_v39 }
  0x9f   :  { %392 = vmatmul.bf16.gmra.mxu1 %v747_v39 }
  0xa0   :  { %441 = vmatmul.bf16.gmra.mxu2 %v747_v39  ;;  %490 = vmatmul.bf16.gmra.mxu3 %v747_v39 }
  0xab   :  { %v309_v40 = vpop.f32.mrf.mxu0 }
  0xac   :  { %v358_v41 = vpop.f32.mrf.mxu1 }
  0xad   :  { %v496_v42 = vpack.c.bf16 %v358_v41, %v309_v40 }
  0xaf   :  { %528 = vst [vmem:[#allocation7] sm:$0xff] %v496_v42 }
  0xb3   :  { %v407_v43 = vpop.f32.mrf.mxu2  ;;  %v456_v44 = vpop.f32.mrf.mxu3 }
  0xb4   :  { %v311_v45 = vpop.f32.mrf.mxu0  ;;  %v497_v46 = vpack.c.bf16 %v456_v44, %v407_v43  ;;  %v360_v47 = vpop.f32.mrf.mxu1 }
  0xb5   :  { %v498_v48 = vpack.c.bf16 %v360_v47, %v311_v45 }
  0xb6   :  { %529 = vst [vmem:[#allocation7 + $0x8] sm:$0xff] %v497_v46 }
  0xb7   :  { %530 = vst [vmem:[#allocation7 + $0x10] sm:$0xff] %v498_v48 }
  0xbb   :  { %v409_v49 = vpop.f32.mrf.mxu2  ;;  %v458_v50 = vpop.f32.mrf.mxu3 }
  0xbc   :  { %v314_v51 = vpop.f32.mrf.mxu0  ;;  %v499_v52 = vpack.c.bf16 %v458_v50, %v409_v49  ;;  %v363_v53 = vpop.f32.mrf.mxu1 }
  0xbd   :  { %v500_v54 = vpack.c.bf16 %v363_v53, %v314_v51 }
  0xbe   :  { %531 = vst [vmem:[#allocation7 + $0x18] sm:$0xff] %v499_v52 }
  0xbf   :  { %532 = vst [vmem:[#allocation7 + $0x20] sm:$0xff] %v500_v54 }
  0xc3   :  { %v412_v55 = vpop.f32.mrf.mxu2  ;;  %v461_v56 = vpop.f32.mrf.mxu3 }
  0xc4   :  { %v316_v57 = vpop.f32.mrf.mxu0  ;;  %v501_v58 = vpack.c.bf16 %v461_v56, %v412_v55  ;;  %v365_v59 = vpop.f32.mrf.mxu1 }
  0xc5   :  { %v502_v60 = vpack.c.bf16 %v365_v59, %v316_v57 }
  0xc6   :  { %533 = vst [vmem:[#allocation7 + $0x28] sm:$0xff] %v501_v58 }
  0xc7   :  { %534 = vst [vmem:[#allocation7 + $0x30] sm:$0xff] %v502_v60 }
  0xcb   :  { %v414_v61 = vpop.f32.mrf.mxu2  ;;  %v463_v62 = vpop.f32.mrf.mxu3 }
  0xcc   :  { %v319_v63 = vpop.f32.mrf.mxu0  ;;  %v503_v0 = vpack.c.bf16 %v463_v62, %v414_v61  ;;  %v368_v1 = vpop.f32.mrf.mxu1 }
  0xcd   :  { %v504_v2 = vpack.c.bf16 %v368_v1, %v319_v63 }
  0xce   :  { %535 = vst [vmem:[#allocation7 + $0x38] sm:$0xff] %v503_v0 }
  0xcf   :  { %536 = vst [vmem:[#allocation7 + $0x40] sm:$0xff] %v504_v2 }
  0xd3   :  { %v417_v3 = vpop.f32.mrf.mxu2  ;;  %v466_v4 = vpop.f32.mrf.mxu3 }
  0xd4   :  { %v321_v5 = vpop.f32.mrf.mxu0  ;;  %v505_v6 = vpack.c.bf16 %v466_v4, %v417_v3  ;;  %v370_v7 = vpop.f32.mrf.mxu1 }
  0xd5   :  { %v506_v8 = vpack.c.bf16 %v370_v7, %v321_v5 }
  0xd6   :  { %537 = vst [vmem:[#allocation7 + $0x48] sm:$0xff] %v505_v6 }
  0xd7   :  { %538 = vst [vmem:[#allocation7 + $0x50] sm:$0xff] %v506_v8 }
  0xdb   :  { %v419_v9 = vpop.f32.mrf.mxu2  ;;  %v468_v10 = vpop.f32.mrf.mxu3 }
  0xdc   :  { %v324_v11 = vpop.f32.mrf.mxu0  ;;  %v507_v12 = vpack.c.bf16 %v468_v10, %v419_v9  ;;  %v373_v13 = vpop.f32.mrf.mxu1 }
  0xdd   :  { %v508_v14 = vpack.c.bf16 %v373_v13, %v324_v11 }
  0xde   :  { %539 = vst [vmem:[#allocation7 + $0x58] sm:$0xff] %v507_v12 }
  0xdf   :  { %540 = vst [vmem:[#allocation7 + $0x60] sm:$0xff] %v508_v14 }
  0xe3   :  { %v422_v15 = vpop.f32.mrf.mxu2  ;;  %v471_v16 = vpop.f32.mrf.mxu3 }
  0xe4   :  { %v326_v17 = vpop.f32.mrf.mxu0  ;;  %v509_v18 = vpack.c.bf16 %v471_v16, %v422_v15  ;;  %v375_v19 = vpop.f32.mrf.mxu1 }
  0xe5   :  { %v510_v20 = vpack.c.bf16 %v375_v19, %v326_v17 }
  0xe6   :  { %541 = vst [vmem:[#allocation7 + $0x68] sm:$0xff] %v509_v18 }
  0xe7   :  { %542 = vst [vmem:[#allocation7 + $0x70] sm:$0xff] %v510_v20 }
  0xeb   :  { %v424_v21 = vpop.f32.mrf.mxu2  ;;  %v473_v22 = vpop.f32.mrf.mxu3 }
  0xec   :  { %v329_v23 = vpop.f32.mrf.mxu0  ;;  %v511_v24 = vpack.c.bf16 %v473_v22, %v424_v21  ;;  %v378_v25 = vpop.f32.mrf.mxu1 }
  0xed   :  { %v512_v26 = vpack.c.bf16 %v378_v25, %v329_v23 }
  0xee   :  { %543 = vst [vmem:[#allocation7 + $0x78] sm:$0xff] %v511_v24 }
  0xef   :  { %544 = vst [vmem:[#allocation7 + $0x80] sm:$0xff] %v512_v26 }
  0xf3   :  { %v427_v27 = vpop.f32.mrf.mxu2  ;;  %v476_v28 = vpop.f32.mrf.mxu3 }
  0xf4   :  { %v331_v29 = vpop.f32.mrf.mxu0  ;;  %v513_v30 = vpack.c.bf16 %v476_v28, %v427_v27  ;;  %v380_v31 = vpop.f32.mrf.mxu1 }
  0xf5   :  { %v514_v32 = vpack.c.bf16 %v380_v31, %v331_v29 }
  0xf6   :  { %545 = vst [vmem:[#allocation7 + $0x88] sm:$0xff] %v513_v30 }
  0xf7   :  { %546 = vst [vmem:[#allocation7 + $0x90] sm:$0xff] %v514_v32 }
  0xfb   :  { %v429_v33 = vpop.f32.mrf.mxu2  ;;  %v478_v34 = vpop.f32.mrf.mxu3 }
  0xfc   :  { %v334_v35 = vpop.f32.mrf.mxu0  ;;  %v515_v36 = vpack.c.bf16 %v478_v34, %v429_v33  ;;  %v383_v37 = vpop.f32.mrf.mxu1 }
  0xfd   :  { %v516_v38 = vpack.c.bf16 %v383_v37, %v334_v35 }
  0xfe   :  { %547 = vst [vmem:[#allocation7 + $0x98] sm:$0xff] %v515_v36 }
  0xff   :  { %548 = vst [vmem:[#allocation7 + $0xa0] sm:$0xff] %v516_v38 }
 0x103   :  { %v432_v39 = vpop.f32.mrf.mxu2  ;;  %v481_v40 = vpop.f32.mrf.mxu3 }
 0x104   :  { %v336_v41 = vpop.f32.mrf.mxu0  ;;  %v517_v42 = vpack.c.bf16 %v481_v40, %v432_v39  ;;  %v385_v43 = vpop.f32.mrf.mxu1 }
 0x105   :  { %v518_v44 = vpack.c.bf16 %v385_v43, %v336_v41 }
 0x106   :  { %549 = vst [vmem:[#allocation7 + $0xa8] sm:$0xff] %v517_v42 }
 0x107   :  { %550 = vst [vmem:[#allocation7 + $0xb0] sm:$0xff] %v518_v44 }
 0x10b   :  { %v434_v45 = vpop.f32.mrf.mxu2  ;;  %v483_v46 = vpop.f32.mrf.mxu3 }
 0x10c   :  { %v339_v47 = vpop.f32.mrf.mxu0  ;;  %v519_v48 = vpack.c.bf16 %v483_v46, %v434_v45  ;;  %v388_v49 = vpop.f32.mrf.mxu1 }
 0x10d   :  { %v520_v50 = vpack.c.bf16 %v388_v49, %v339_v47 }
 0x10e   :  { %551 = vst [vmem:[#allocation7 + $0xb8] sm:$0xff] %v519_v48 }
 0x10f   :  { %552 = vst [vmem:[#allocation7 + $0xc0] sm:$0xff] %v520_v50 }
 0x113   :  { %v437_v51 = vpop.f32.mrf.mxu2  ;;  %v486_v52 = vpop.f32.mrf.mxu3 }
 0x114   :  { %v341_v53 = vpop.f32.mrf.mxu0  ;;  %v521_v54 = vpack.c.bf16 %v486_v52, %v437_v51  ;;  %v390_v55 = vpop.f32.mrf.mxu1 }
 0x115   :  { %v522_v56 = vpack.c.bf16 %v390_v55, %v341_v53 }
 0x116   :  { %553 = vst [vmem:[#allocation7 + $0xc8] sm:$0xff] %v521_v54 }
 0x117   :  { %554 = vst [vmem:[#allocation7 + $0xd0] sm:$0xff] %v522_v56 }
 0x11b   :  { %v439_v57 = vpop.f32.mrf.mxu2  ;;  %v488_v58 = vpop.f32.mrf.mxu3 }
 0x11c   :  { %v344_v59 = vpop.f32.mrf.mxu0  ;;  %v523_v60 = vpack.c.bf16 %v488_v58, %v439_v57  ;;  %v393_v61 = vpop.f32.mrf.mxu1 }
 0x11d   :  { %v524_v62 = vpack.c.bf16 %v393_v61, %v344_v59 }
 0x11e   :  { %555 = vst [vmem:[#allocation7 + $0xd8] sm:$0xff] %v523_v60 }
 0x11f   :  { %556 = vst [vmem:[#allocation7 + $0xe0] sm:$0xff] %v524_v62 }
 0x123   :  { %v442_v63 = vpop.f32.mrf.mxu2  ;;  %v491_v0 = vpop.f32.mrf.mxu3 }
 0x124   :  { %v346_v1 = vpop.f32.mrf.mxu0  ;;  %v525_v2 = vpack.c.bf16 %v491_v0, %v442_v63  ;;  %v395_v3 = vpop.f32.mrf.mxu1 }
 0x125   :  { %v526_v4 = vpack.c.bf16 %v395_v3, %v346_v1 }
 0x126   :  { %557 = vst [vmem:[#allocation7 + $0xe8] sm:$0xff] %v525_v2 }
 0x127   :  { %558 = vst [vmem:[#allocation7 + $0xf0] sm:$0xff] %v526_v4 }
 0x12b   :  { %v444_v5 = vpop.f32.mrf.mxu2  ;;  %v493_v6 = vpop.f32.mrf.mxu3 }
 0x12c   :  { %v527_v7 = vpack.c.bf16 %v493_v6, %v444_v5 }
 0x12e   :  { %559 = vst [vmem:[#allocation7 + $0xf8] sm:$0xff] %v527_v7 }
 0x12f   :  { %572 = dma.vmem_to_hbm [thread:$0]  %s565_s1, 4096, %s567_s25, [#allocation4], %s869_s21, %s869_s21, %s870_s22  }
 0x130   :  { %863 = dma.done.wait [#allocation4], 4096  }
 0x131   :  { %864 = vsyncadd [#allocation4], 4294963200 }
 0x132   :  { %577 = vsyncpa [#allocation3], 1 }
 0x133   :  { %578 = vsyncpa [#allocation6], 1 }
 0x134   :  { %579 = vsyncpa [#allocation4], 1 }

</bundles_post_ra>
